<compile_context>
chip_gen: v6e
topology: v6e:2x2x1
jax: 0.10.0
libtpu: 0.0.40
codegen_flags: <defaults>
</compile_context>

<pallas_src>
import functools
import math

import jax
import jax.numpy as jnp
from jax.experimental import pallas as pl
from jax.experimental.pallas import tpu as pltpu

LN_EPS = 1e-12          # BERT LayerNorm eps
MASK_BIAS = -10000.0    # additive bias for padded keys (HF extended attention mask)
VMEM_LIMIT = 48 * 1024 * 1024   # > v5e(16)/v6e(32) scoped defaults, < v7x 64 MiB physical


# ---------------------------------------------------------------------------
# Tiling helpers
# ---------------------------------------------------------------------------

def _pick_tile(dim, pref, align):
    """Largest align-multiple tile <= pref dividing dim, else the full dim."""
    if dim <= pref:
        return dim
    t = (pref // align) * align
    while t >= align:
        if dim % t == 0:
            return t
        t -= align
    return dim


def _pad_rows(x, mult=8):
    """Pad rows to a multiple of `mult` so row tiles always satisfy (8,128)."""
    m = x.shape[0]
    pad = (-m) % mult
    if pad:
        x = jnp.pad(x, ((0, pad), (0, 0)))
    return x, m


def _heads_per_group(n_heads, head_dim):
    """Heads per attention grid step; group width is a 128-lane multiple when possible."""
    if head_dim >= 128 or 128 % head_dim != 0:
        g = 1
    else:
        g = min(128 // head_dim, n_heads)
    while n_heads % g:
        g -= 1
    return g


# ---------------------------------------------------------------------------
# Matmul + bias (+ optional exact GELU) — bf16 MXU, f32 math, single K pass
# ---------------------------------------------------------------------------

def _matmul_bias_kernel(x_ref, w_ref, b_ref, o_ref, *, activation):
    y = jnp.dot(x_ref[...], w_ref[...], preferred_element_type=jnp.float32)
    y = y + b_ref[...]
    if activation == "gelu":                       # exact (erf) GELU, f32
        y = 0.5 * y * (1.0 + jax.lax.erf(y * (1.0 / math.sqrt(2.0))))
    o_ref[...] = y.astype(o_ref.dtype)


def matmul_bias(x, w, b, activation=None, out_dtype=jnp.bfloat16,
                tm_pref=256, tn_pref=512):
    # tk = K: the x tile's index_map is (i, 0), constant while j advances, so
    # the activation block is fetched once per row-block and kept resident.
    x, m0 = _pad_rows(x)
    M, K = x.shape
    _, N = w.shape
    tm = _pick_tile(M, tm_pref, 8)
    tn = _pick_tile(N, tn_pref, 128)
    out = pl.pallas_call(
        functools.partial(_matmul_bias_kernel, activation=activation),
        out_shape=jax.ShapeDtypeStruct((M, N), out_dtype),
        grid=(M // tm, N // tn),
        in_specs=[pl.BlockSpec((tm, K), lambda i, j: (i, 0)),
                  pl.BlockSpec((K, tn), lambda i, j: (0, j)),
                  pl.BlockSpec((1, tn), lambda i, j: (0, j))],
        out_specs=pl.BlockSpec((tm, tn), lambda i, j: (i, j)),
        compiler_params=pltpu.CompilerParams(
            dimension_semantics=("parallel", "parallel"),
            vmem_limit_bytes=VMEM_LIMIT),
    )(x, w, b)
    return out[:m0] if m0 != M else out


# ---------------------------------------------------------------------------
# Fused matmul + bias + residual-add + LayerNorm (N == H, full row in epilogue)
# Emits both f32 (residual stream) and bf16 (next matmul input) copies.
# ---------------------------------------------------------------------------

def _matmul_add_ln_kernel(x_ref, w_ref, b_ref, res_ref, g_ref, be_ref,
                          o32_ref, o16_ref):
    y = jnp.dot(x_ref[...], w_ref[...], preferred_element_type=jnp.float32)
    h = y + b_ref[...] + res_ref[...]
    mu = jnp.mean(h, axis=-1, keepdims=True)
    var = jnp.mean(jnp.square(h - mu), axis=-1, keepdims=True)
    out = (h - mu) * jax.lax.rsqrt(var + LN_EPS) * g_ref[...] + be_ref[...]
    o32_ref[...] = out
    o16_ref[...] = out.astype(jnp.bfloat16)


def matmul_add_layernorm(x, w, b, res, gamma, beta, tm_pref=256):
    x, m0 = _pad_rows(x)
    res, _ = _pad_rows(res)
    M, K = x.shape
    _, H = w.shape
    tm = _pick_tile(M, tm_pref, 8)
    row = lambda i: (i, 0)
    vec = lambda i: (0, 0)
    out32, out16 = pl.pallas_call(
        _matmul_add_ln_kernel,
        out_shape=(jax.ShapeDtypeStruct((M, H), jnp.float32),
                   jax.ShapeDtypeStruct((M, H), jnp.bfloat16)),
        grid=(M // tm,),
        in_specs=[pl.BlockSpec((tm, K), row),     # bf16 activations
                  pl.BlockSpec((K, H), vec),      # bf16 weight, resident
                  pl.BlockSpec((1, H), vec),      # bias
                  pl.BlockSpec((tm, H), row),     # f32 residual
                  pl.BlockSpec((1, H), vec),      # gamma
                  pl.BlockSpec((1, H), vec)],     # beta
        out_specs=[pl.BlockSpec((tm, H), row),
                   pl.BlockSpec((tm, H), row)],
        compiler_params=pltpu.CompilerParams(
            dimension_semantics=("parallel",),
            vmem_limit_bytes=VMEM_LIMIT),
    )(x, w, b, res, gamma, beta)
    if m0 != M:
        out32, out16 = out32[:m0], out16[:m0]
    return out32, out16


# ---------------------------------------------------------------------------
# Row-tiled add + LayerNorm (embeddings only) — f32 math, dual f32/bf16 output
# ---------------------------------------------------------------------------

def _add_layernorm_kernel(x_ref, y_ref, g_ref, b_ref, o32_ref, o16_ref):
    h = x_ref[...] + y_ref[...]
    mu = jnp.mean(h, axis=-1, keepdims=True)
    var = jnp.mean(jnp.square(h - mu), axis=-1, keepdims=True)
    out = (h - mu) * jax.lax.rsqrt(var + LN_EPS) * g_ref[...] + b_ref[...]
    o32_ref[...] = out
    o16_ref[...] = out.astype(jnp.bfloat16)


def add_layernorm(x, y, gamma, beta, tm_pref=512):
    x, m0 = _pad_rows(x)
    y, _ = _pad_rows(y)
    M, H = x.shape
    tm = _pick_tile(M, tm_pref, 8)
    row_spec = pl.BlockSpec((tm, H), lambda i: (i, 0))
    vec_spec = pl.BlockSpec((1, H), lambda i: (0, 0))
    out32, out16 = pl.pallas_call(
        _add_layernorm_kernel,
        out_shape=(jax.ShapeDtypeStruct((M, H), jnp.float32),
                   jax.ShapeDtypeStruct((M, H), jnp.bfloat16)),
        grid=(M // tm,),
        in_specs=[row_spec, row_spec, vec_spec, vec_spec],
        out_specs=[row_spec, row_spec],
        compiler_params=pltpu.CompilerParams(
            dimension_semantics=("parallel",),
            vmem_limit_bytes=VMEM_LIMIT),
    )(x, y, gamma, beta)
    if m0 != M:
        out32, out16 = out32[:m0], out16[:m0]
    return out32, out16


# ---------------------------------------------------------------------------
# Attention: grid = (batch, head-group), group-contiguous q|k|v lane block in,
# one lane-dense (S, group_width) context store out.
# ---------------------------------------------------------------------------
# TODO(synk): for sequence lengths beyond BERT's 512, tile over the KV axis
# with a flash-style online softmax instead of materializing (S, S) per head.

def _attention_kernel(m_ref, qkv_ref, o_ref, *, heads_per_group, head_dim):
    gw = heads_per_group * head_dim
    qkv = qkv_ref[...]                   # (S, 3*gw) bf16: [q | k | v] of this head group
    bias = m_ref[0]                      # (1, S)  f32 additive pad-mask
    ctx = []
    for hh in range(heads_per_group):    # static unroll, <= 2 heads for BERT-base
        q = qkv[:, hh * head_dim:(hh + 1) * head_dim]
        k = qkv[:, gw + hh * head_dim:gw + (hh + 1) * head_dim]
        v = qkv[:, 2 * gw + hh * head_dim:2 * gw + (hh + 1) * head_dim]
        # 1/sqrt(head_dim) already folded into Wq at init.
        # TODO(synk): if the Mosaic dump shows an XLU transpose feeding this
        # dot_general, emit K pre-transposed (head_dim, S) out of the QKV matmul.
        s = jax.lax.dot_general(q, k, (((1,), (1,)), ((), ())),
                                preferred_element_type=jnp.float32)
        s = s + bias
        s = s - jnp.max(s, axis=-1, keepdims=True)
        p = jnp.exp(s)
        p = p * pl.reciprocal(jnp.sum(p, axis=-1, keepdims=True), approx=True)
        ctx.append(jnp.dot(p.astype(jnp.bfloat16), v,
                           preferred_element_type=jnp.float32))
    grp = ctx[0] if len(ctx) == 1 else jnp.concatenate(ctx, axis=-1)
    o_ref[...] = grp.astype(o_ref.dtype)   # single lane-dense (S, gw) store


def attention(qkv, mask_bias, B, S, n_heads, heads_per_group):
    # qkv: (B*S, 3H) bf16 laid out per head group: [q_g | k_g | v_g] blocks
    M, H3 = qkv.shape
    H = H3 // 3
    head_dim = H // n_heads
    gw = heads_per_group * head_dim
    n_groups = n_heads // heads_per_group
    assert M == B * S
    assert S % 8 == 0 or B == 1, "sequence length must be a multiple of 8"
    return pl.pallas_call(
        functools.partial(_attention_kernel, heads_per_group=heads_per_group,
                          head_dim=head_dim),
        out_shape=jax.ShapeDtypeStruct((M, H), jnp.bfloat16),
        grid=(B, n_groups),
        in_specs=[pl.BlockSpec((1, 1, S), lambda b, g: (b, 0, 0)),
                  pl.BlockSpec((S, 3 * gw), lambda b, g: (b, g))],
        out_specs=pl.BlockSpec((S, gw), lambda b, g: (b, g)),
        compiler_params=pltpu.CompilerParams(
            dimension_semantics=("parallel", "parallel"),
            vmem_limit_bytes=VMEM_LIMIT),
    )(mask_bias, qkv)


# ---------------------------------------------------------------------------
# Parameter init (deterministic, synthetic — no checkpoint load)
# ---------------------------------------------------------------------------

def init_params(key, cfg):
    H, I, V, P = cfg["hidden"], cfg["intermediate"], cfg["vocab"], cfg["max_pos"]
    n_heads = cfg["heads"]
    head_dim = H // n_heads
    hpg = _heads_per_group(n_heads, head_dim)
    gw = hpg * head_dim
    n_groups = n_heads // hpg
    scale = 1.0 / math.sqrt(head_dim)

    def normal(k, shape):
        return 0.02 * jax.random.normal(k, shape, dtype=jnp.float32)

    keys = jax.random.split(key, 3 + cfg["layers"])
    params = {
        "word_emb": normal(keys[0], (V, H)),
        "pos_emb":  normal(keys[1], (P, H)),
        "type_emb": normal(keys[2], (2, H)),
        "emb_ln_g": jnp.ones((1, H), jnp.float32),
        "emb_ln_b": jnp.zeros((1, H), jnp.float32),
        "heads_per_group": hpg,
        "layers": [],
    }
    for li in range(cfg["layers"]):
        lk = jax.random.split(keys[3 + li], 6)
        wq = normal(lk[0], (H, H)) * scale     # fold softmax scale into Wq (free)
        wk = normal(lk[1], (H, H))
        wv = normal(lk[2], (H, H))
        # Fused QKV weight, group-interleaved columns:
        # [q_g0 | k_g0 | v_g0 | q_g1 | k_g1 | v_g1 | ...]
        cols = []
        for g in range(n_groups):
            sl = slice(g * gw, (g + 1) * gw)
            cols += [wq[:, sl], wk[:, sl], wv[:, sl]]
        w_qkv = jnp.concatenate(cols, axis=1).astype(jnp.bfloat16)
        params["layers"].append({
            "w_qkv": w_qkv,
            "b_qkv": jnp.zeros((1, 3 * H), jnp.float32),
            "wo": normal(lk[3], (H, H)).astype(jnp.bfloat16),
            "bo": jnp.zeros((1, H), jnp.float32),
            "ln1_g": jnp.ones((1, H), jnp.float32),
            "ln1_b": jnp.zeros((1, H), jnp.float32),
            "w1": normal(lk[4], (H, I)).astype(jnp.bfloat16),
            "b1": jnp.zeros((1, I), jnp.float32),
            "w2": normal(lk[5], (I, H)).astype(jnp.bfloat16),
            "b2": jnp.zeros((1, H), jnp.float32),
            "ln2_g": jnp.ones((1, H), jnp.float32),
            "ln2_b": jnp.zeros((1, H), jnp.float32),
        })
    return params


# ---------------------------------------------------------------------------
# BERT forward (== self.bert(input_ids, attention_mask=(ids != pad).int())[0])
# ---------------------------------------------------------------------------

def encoder_layer(p, h32, h16, mask_bias, B, S, n_heads, hpg):
    # h32: (B*S, H) f32 residual stream; h16: bf16 copy for the MXU
    qkv = matmul_bias(h16, p["w_qkv"], p["b_qkv"], out_dtype=jnp.bfloat16)   # (M, 3H)
    ctx = attention(qkv, mask_bias, B, S, n_heads, hpg)                       # (M, H) bf16
    h32, h16 = matmul_add_layernorm(ctx, p["wo"], p["bo"], h32,
                                    p["ln1_g"], p["ln1_b"])                   # fused Wo + add + LN

    ffn = matmul_bias(h16, p["w1"], p["b1"], activation="gelu",
                      out_dtype=jnp.bfloat16)                                 # (M, I) bf16
    h32, h16 = matmul_add_layernorm(ffn, p["w2"], p["b2"], h32,
                                    p["ln2_g"], p["ln2_b"])                   # fused W2 + add + LN
    return h32, h16


def bert_forward(params, input_ids, pad_idx, cfg):
    B, S = input_ids.shape
    H = cfg["hidden"]

    # --- embeddings (gathers are glue; sum + LayerNorm in Pallas) ---
    word = jnp.take(params["word_emb"], input_ids, axis=0)          # (B, S, H)
    pos = params["pos_emb"][:S][None, :, :]                          # (1, S, H)
    typ = jnp.broadcast_to(params["type_emb"][0], (B * S, H))        # token_type_ids == 0
    x = (word + pos).reshape(B * S, H)
    h32, h16 = add_layernorm(x, typ, params["emb_ln_g"], params["emb_ln_b"])

    # --- attention mask from pad tokens ---
    attn_mask = (input_ids != pad_idx).astype(jnp.float32)           # (B, S)
    mask_bias = ((1.0 - attn_mask) * MASK_BIAS)[:, None, :]          # (B, 1, S)

    for lp in params["layers"]:
        h32, h16 = encoder_layer(lp, h32, h16, mask_bias, B, S,
                                 cfg["heads"], params["heads_per_group"])

    return h32.reshape(B, S, H)                                      # last_hidden_state


# ---------------------------------------------------------------------------
# Main
# ---------------------------------------------------------------------------

if __name__ == "__main__":
    cfg = dict(vocab=64, hidden=32, layers=2, heads=4, intermediate=64, max_pos=16)

    params = init_params(jax.random.PRNGKey(0), cfg)

    # Synthetic vocab standing in for BertTokenizer.get_vocab()
    vocab = {"[PAD]": 0, "[UNK]": 1, "[CLS]": 2, "[SEP]": 3}
    for i, w in enumerate(["i", "love", "you", "pallas", "tpu", "kernels"]):
        vocab[w] = 4 + i
    pad_idx = vocab["[PAD]"]
    unk_idx = vocab["[UNK]"]

    # Batch of sentences with special tokens already added (as in the module docstring)
    data = [
        ["[CLS]", "i", "love", "you", "[SEP]", "[PAD]", "[PAD]", "[PAD]"],
        ["[CLS]", "pallas", "tpu", "kernels", "rock", "[SEP]", "[PAD]", "[PAD]"],
    ]
    # string -> id lookup with UNK fallback (mirrors the module's python loop)
    input_ids = jnp.array(
        [[vocab.get(s, unk_idx) for s in sent] for sent in data], dtype=jnp.int32
    )  # (2, 8)

    out = bert_forward(params, input_ids, pad_idx, cfg)
    out = jax.block_until_ready(out)
    assert out.shape == (2, 8, cfg["hidden"]) and out.dtype == jnp.float32
    assert bool(jnp.all(jnp.isfinite(out)))
    print("KERNEL_OK")
</pallas_src>

<mosaic_0001>
module attributes {stable_mosaic.version = 11 : i64} {
  func.func @_add_layernorm_kernel(%arg0: i32, %arg1: memref<16x32xf32, #tpu.memory_space<vmem>>, %arg2: memref<16x32xf32, #tpu.memory_space<vmem>>, %arg3: memref<1x32xf32, #tpu.memory_space<vmem>>, %arg4: memref<1x32xf32, #tpu.memory_space<vmem>>, %arg5: memref<16x32xf32, #tpu.memory_space<vmem>>, %arg6: memref<16x32xbf16, #tpu.memory_space<vmem>>) attributes {dimension_semantics = [#tpu.dimension_semantics<parallel>], iteration_bounds = array<i64: 1>, scalar_prefetch = 0 : i64, scratch_operands = 0 : i64, tpu.core_type = #tpu.core_type<tc>, window_params = [{transform_indices = @transform_0, window_bounds = array<i64: 16, 32>}, {transform_indices = @transform_1, window_bounds = array<i64: 16, 32>}, {pipeline_mode = #tpu.pipeline_mode<synchronous>, transform_indices = @transform_2, window_bounds = array<i64: 1, 32>}, {pipeline_mode = #tpu.pipeline_mode<synchronous>, transform_indices = @transform_3, window_bounds = array<i64: 1, 32>}, {transform_indices = @transform_4, window_bounds = array<i64: 16, 32>}, {transform_indices = @transform_5, window_bounds = array<i64: 16, 32>}]} {
    %c0 = arith.constant 0 : index
    %c0_0 = arith.constant 0 : index
    %0 = vector.load %arg1[%c0, %c0_0] : memref<16x32xf32, #tpu.memory_space<vmem>>, vector<16x32xf32>
    %c0_1 = arith.constant 0 : index
    %c0_2 = arith.constant 0 : index
    %1 = vector.load %arg2[%c0_1, %c0_2] : memref<16x32xf32, #tpu.memory_space<vmem>>, vector<16x32xf32>
    %2 = arith.addf %0, %1 : vector<16x32xf32>
    %cst = arith.constant dense<0.000000e+00> : vector<16xf32>
    %3 = vector.multi_reduction <add>, %2, %cst [1] : vector<16x32xf32> to vector<16xf32>
    %4 = vector.shape_cast %3 : vector<16xf32> to vector<16x1xf32>
    %cst_3 = arith.constant 3.200000e+01 : f32
    %5 = vector.broadcast %cst_3 : f32 to vector<16x1xf32>
    %6 = arith.divf %4, %5 : vector<16x1xf32>
    %7 = vector.broadcast %6 : vector<16x1xf32> to vector<16x32xf32>
    %8 = arith.subf %2, %7 : vector<16x32xf32>
    %9 = arith.mulf %8, %8 : vector<16x32xf32>
    %cst_4 = arith.constant dense<0.000000e+00> : vector<16xf32>
    %10 = vector.multi_reduction <add>, %9, %cst_4 [1] : vector<16x32xf32> to vector<16xf32>
    %11 = vector.shape_cast %10 : vector<16xf32> to vector<16x1xf32>
    %cst_5 = arith.constant 3.200000e+01 : f32
    %12 = vector.broadcast %cst_5 : f32 to vector<16x1xf32>
    %13 = arith.divf %11, %12 : vector<16x1xf32>
    %14 = vector.broadcast %6 : vector<16x1xf32> to vector<16x32xf32>
    %15 = arith.subf %2, %14 : vector<16x32xf32>
    %cst_6 = arith.constant 9.99999996E-13 : f32
    %16 = vector.broadcast %cst_6 : f32 to vector<16x1xf32>
    %17 = arith.addf %13, %16 : vector<16x1xf32>
    %18 = math.rsqrt %17 : vector<16x1xf32>
    %19 = vector.broadcast %18 : vector<16x1xf32> to vector<16x32xf32>
    %20 = arith.mulf %15, %19 : vector<16x32xf32>
    %c0_7 = arith.constant 0 : index
    %c0_8 = arith.constant 0 : index
    %21 = vector.load %arg3[%c0_7, %c0_8] : memref<1x32xf32, #tpu.memory_space<vmem>>, vector<1x32xf32>
    %22 = vector.broadcast %21 : vector<1x32xf32> to vector<16x32xf32>
    %23 = arith.mulf %20, %22 : vector<16x32xf32>
    %c0_9 = arith.constant 0 : index
    %c0_10 = arith.constant 0 : index
    %24 = vector.load %arg4[%c0_9, %c0_10] : memref<1x32xf32, #tpu.memory_space<vmem>>, vector<1x32xf32>
    %25 = vector.broadcast %24 : vector<1x32xf32> to vector<16x32xf32>
    %26 = arith.addf %23, %25 : vector<16x32xf32>
    %c0_11 = arith.constant 0 : index
    %c0_12 = arith.constant 0 : index
    %27 = vector.load %arg5[%c0_11, %c0_12] : memref<16x32xf32, #tpu.memory_space<vmem>>, vector<16x32xf32>
    tpu.vector_store %arg5[%c0_11, %c0_12], %26 {strides = array<i32>} : memref<16x32xf32, #tpu.memory_space<vmem>>, vector<16x32xf32>,
    %28 = arith.truncf %26 : vector<16x32xf32> to vector<16x32xbf16>
    %c0_13 = arith.constant 0 : index
    %c0_14 = arith.constant 0 : index
    %29 = vector.load %arg6[%c0_13, %c0_14] : memref<16x32xbf16, #tpu.memory_space<vmem>>, vector<16x32xbf16>
    tpu.vector_store %arg6[%c0_13, %c0_14], %28 {strides = array<i32>} : memref<16x32xbf16, #tpu.memory_space<vmem>>, vector<16x32xbf16>,
    return
  }
  func.func @transform_0(%arg0: i32) -> (i32, i32) {
    %c0_i32 = arith.constant 0 : i32
    %c0_i32_0 = arith.constant 0 : i32
    return %arg0, %c0_i32 : i32, i32
  }
  func.func @transform_1(%arg0: i32) -> (i32, i32) {
    %c0_i32 = arith.constant 0 : i32
    %c0_i32_0 = arith.constant 0 : i32
    return %arg0, %c0_i32 : i32, i32
  }
  func.func @transform_2(%arg0: i32) -> (i32, i32) {
    %c0_i32 = arith.constant 0 : i32
    %c0_i32_0 = arith.constant 0 : i32
    %c0_i32_1 = arith.constant 0 : i32
    return %c0_i32, %c0_i32_0 : i32, i32
  }
  func.func @transform_3(%arg0: i32) -> (i32, i32) {
    %c0_i32 = arith.constant 0 : i32
    %c0_i32_0 = arith.constant 0 : i32
    %c0_i32_1 = arith.constant 0 : i32
    return %c0_i32, %c0_i32_0 : i32, i32
  }
  func.func @transform_4(%arg0: i32) -> (i32, i32) {
    %c0_i32 = arith.constant 0 : i32
    %c0_i32_0 = arith.constant 0 : i32
    return %arg0, %c0_i32 : i32, i32
  }
  func.func @transform_5(%arg0: i32) -> (i32, i32) {
    %c0_i32 = arith.constant 0 : i32
    %c0_i32_0 = arith.constant 0 : i32
    return %arg0, %c0_i32 : i32, i32
  }
}

</mosaic_0001>

<bundles_post_ra>
// kernel: tpu_custom_call.1
= control target key start
LH: loop header
LB: loop body
LE: loop exit
PB: predicated region body
PF: predicated region fallthrough
CT: control target
= control target key end

     0   :  { %11 = vsyncpa [#allocation3], 0  ;;  %s327_s0 = inlined_call_operand.hbm [shape: f32[16,32], index: 0, kind: input, shape index: {}]   ;;  %s328_s1 = inlined_call_operand.hbm [shape: f32[16,32], index: 1, kind: input, shape index: {}]   ;;  %s329_s2 = inlined_call_operand.vmem [shape: f32[1,32], index: 2, kind: input, shape index: {}]   ;;  %s330_s3 = inlined_call_operand.vmem [shape: f32[1,32], index: 3, kind: input, shape index: {}]   ;;  %s331_s4 = inlined_call_operand.hbm [shape: f32[16,32], index: 4, kind: output, shape index: {0}]   ;;  %s332_s5 = inlined_call_operand.hbm [shape: bf16[16,32], index: 5, kind: output, shape index: {1}]  }
   0x1   :  { %12 = vsyncpa [#allocation6], 0 }
   0x2   :  { %13 = vsyncpa [#allocation4], 0 }
   0x3   :  { %14 = vsyncpa [#allocation9], 0  ;;  %s254_s18 = smov [#allocation2]  }
   0x4   :  { %s20_s19 = sshll.u32 %s254_s18, 4  ;;  %s21_s19 = int_to_ptr.vmem [resolvable:$true] %s20_s19 }
   0x5   :  { %s174_s20 = scalar_lea.vmem %s21_s19, 256  ;;  %p179_p1 = scmp.lt.s32.totalorder %s21_s19, %s21_s19 }
   0x6   :  { %p175_p0 = scmp.ne.s32.totalorder %s21_s19, %s174_s20  ;;  %p180_p2 = scmp.lt.s32.totalorder %s174_s20, %s174_s20 }
   0x8   :  { %p181_p3 = por %p180_p2, %p179_p1 }
   0xa   :  { %p182_p4 = pnand %p181_p3, %p175_p0 }
   0xc   :  { %185 = shalt.err (!%p182_p4)
}
   0xd   :  { %s255_s21 = smov 128   ;;  %s256_s22 = smov 8  }
   0xe   :  { %26 = dma.hbm_to_vmem [thread:$0]  %s327_s0, 256, %s21_s19, [#allocation3], %s255_s21, %s255_s21, %s256_s22  }
   0xf   :  { %s257_s25 = smov [#allocation5]  }
  0x10   :  { %s32_s26 = sshll.u32 %s257_s25, 4  ;;  %s33_s26 = int_to_ptr.vmem [resolvable:$true] %s32_s26 }
  0x11   :  { %s194_s27 = scalar_lea.vmem %s33_s26, 256  ;;  %p199_p6 = scmp.lt.s32.totalorder %s33_s26, %s33_s26 }
  0x12   :  { %p195_p5 = scmp.ne.s32.totalorder %s33_s26, %s194_s27  ;;  %p200_p7 = scmp.lt.s32.totalorder %s194_s27, %s194_s27 }
  0x14   :  { %p201_p8 = por %p200_p7, %p199_p6 }
  0x16   :  { %p202_p9 = pnand %p201_p8, %p195_p5 }
  0x18   :  { %205 = shalt.err (!%p202_p9)
}
  0x19   :  { %38 = dma.hbm_to_vmem [thread:$0]  %s328_s1, 256, %s33_s26, [#allocation6], %s255_s21, %s255_s21, %s256_s22  }
  0x1a   :  { %246 = dma.done.wait [#allocation3], 256  }
  0x1b   :  { %247 = vsyncadd [#allocation3], 4294967040 }
  0x1c   :  { %248 = dma.done.wait [#allocation6], 256  }
  0x1d   :  { %249 = vsyncadd [#allocation6], 4294967040  ;;  %v49_v0 = vld [vmem:[#allocation2] sm:$0xff]  ;;  %v51_v1 = vld [vmem:[#allocation5] sm:$0xff]  ;;  %vm55_vm0 = vcmask 261120   ;;  %s258_s7 = smov [#allocation7]  }
  0x1e   :  { %v50_v2 = vld [vmem:[#allocation2 + $0x8] sm:$0xff]  ;;  %v53_v3 = vadd.f32 %v51_v1, %v49_v0  ;;  %v52_v4 = vld [vmem:[#allocation5 + $0x8] sm:$0xff]  ;;  %v148_v25 = vld [vmem:[%s329_s2] ss:$0 sm:$0xff]  ;;  %s119_s8 = sshll.u32 %s258_s7, 4  ;;  %vm111_vm1 = vcmask 257024   ;;  %s120_s8 = int_to_ptr.vmem [resolvable:$true] %s119_s8 }
  0x1f   :  { %v54_v5 = vadd.f32 %v52_v4, %v50_v2  ;;  %v149_v27 = vld [vmem:[%s330_s3] ss:$0 sm:$0xff]  ;;  %s259_s9 = smov [#allocation8]   ;;  %s206_s2 = scalar_lea.vmem %s120_s8, 256 }
  0x20   :  { %v56_v6 = vsel %vm55_vm0, %v53_v3, 0.0  ;;  %s131_s10 = sshll.u32 %s259_s9, 4  ;;  %p207_p10 = scmp.ne.s32.totalorder %s120_s8, %s206_s2  ;;  %s132_s10 = int_to_ptr.vmem [resolvable:$true] %s131_s10 }
  0x21   :  { %57 = vadd.xlane.f32.xlu0 %v56_v6  ;;  %v59_v7 = vsel %vm55_vm0, %v54_v5, 0.0  ;;  %p211_p11 = scmp.lt.s32.totalorder %s120_s8, %s120_s8  ;;  %p212_p12 = scmp.lt.s32.totalorder %s206_s2, %s206_s2 }
  0x23   :  { %p213_p13 = por %p212_p12, %p211_p11 }
  0x25   :  { %60 = vadd.xlane.f32.xlu0 %v59_v7  ;;  %p214_p0 = pnand %p213_p13, %p207_p10 }
  0xaa   :  { %v58_v8 = vpop.xlane.xlu0 %57 }
  0xab   :  { %v63_v9 = vmul.f32 0.03125, %v58_v8 }
  0xad   :  { %v65_v10 = vsub.f32 %v53_v3, %v63_v9 }
  0xae   :  { %v61_v11 = vpop.xlane.xlu0 %60 }
  0xaf   :  { %v64_v12 = vmul.f32 0.03125, %v61_v11  ;;  %v67_v13 = vmul.f32 %v65_v10, %v65_v10 }
  0xb1   :  { %v66_v14 = vsub.f32 %v54_v5, %v64_v12  ;;  %v69_v15 = vsel %vm55_vm0, %v67_v13, 0.0 }
  0xb2   :  { %70 = vadd.xlane.f32.xlu1 %v69_v15 }
  0xb3   :  { %v68_v16 = vmul.f32 %v66_v14, %v66_v14 }
  0xb5   :  { %v72_v17 = vsel %vm55_vm0, %v68_v16, 0.0 }
  0xb6   :  { %73 = vadd.xlane.f32.xlu1 %v72_v17 }
 0x13b   :  { %v71_v18 = vpop.xlane.xlu1 %70 }
 0x13c   :  { %v75_v19 = vmul.f32 0.03125, %v71_v18 }
 0x13e   :  { %v77_v20 = vadd.f32 1e-12, %v75_v19 }
 0x13f   :  { %v74_v21 = vpop.xlane.xlu1 %73 }
 0x140   :  { %162 = vrsqrt.f32 %v77_v20  ;;  %v76_v22 = vmul.f32 0.03125, %v74_v21 }
 0x142   :  { %v78_v23 = vadd.f32 1e-12, %v76_v22 }
 0x144   :  { %164 = vrsqrt.f32 %v78_v23 }
 0x14d   :  { %v163_v24 = vpop.eup %162 }
 0x14e   :  { %v81_v26 = vmul.f32 %v163_v24, %v65_v10 }
 0x150   :  { %v90_v28 = vmul.f32 %v148_v25, %v81_v26 }
 0x151   :  { %v165_v29 = vpop.eup %164 }
 0x152   :  { %v82_v30 = vmul.f32 %v165_v29, %v66_v14  ;;  %v99_v31 = vadd.f32 %v149_v27, %v90_v28 }
 0x154   :  { %v91_v32 = vmul.f32 %v148_v25, %v82_v30  ;;  %101 = vst.msk [vmem:[#allocation7] sm:$0xff] %vm55_vm0, %v99_v31  ;;  %v152_v33 = vpack.c.bf16 %v99_v31, %v99_v31 }
 0x156   :  { %v100_v34 = vadd.f32 %v149_v27, %v91_v32  ;;  %112 = vst.msk [vmem:[#allocation8] sm:$0xf] %vm111_vm1, %v152_v33 }
 0x158   :  { %102 = vst.msk [vmem:[#allocation7 + $0x8] sm:$0xff] %vm55_vm0, %v100_v34  ;;  %v153_v35 = vpack.c.bf16 %v100_v34, %v100_v34 }
 0x159   :  { %217 = shalt.err (!%p214_p0)
}
 0x15a   :  { %125 = dma.vmem_to_hbm [thread:$0]  %s120_s8, 256, %s331_s4, [#allocation4], %s255_s21, %s255_s21, %s256_s22   ;;  %113 = vst.msk [vmem:[#allocation8 + $0x4] sm:$0xf] %vm111_vm1, %v153_v35 }
 0x15b   :  { %s226_s12 = scalar_lea.vmem %s132_s10, 128  ;;  %p231_p2 = scmp.lt.s32.totalorder %s132_s10, %s132_s10 }
 0x15c   :  { %p227_p1 = scmp.ne.s32.totalorder %s132_s10, %s226_s12  ;;  %p232_p3 = scmp.lt.s32.totalorder %s226_s12, %s226_s12 }
 0x15e   :  { %p233_p4 = por %p232_p3, %p231_p2 }
 0x160   :  { %p234_p5 = pnand %p233_p4, %p227_p1 }
 0x162   :  { %237 = shalt.err (!%p234_p5)
}
 0x163   :  { %s260_s13 = smov 64   ;;  %s261_s14 = smov 4  }
 0x164   :  { %137 = dma.vmem_to_hbm [thread:$0]  %s132_s10, 128, %s332_s5, [#allocation9], %s260_s13, %s260_s13, %s261_s14  }
 0x165   :  { %250 = dma.done.wait [#allocation4], 256  }
 0x166   :  { %251 = vsyncadd [#allocation4], 4294967040 }
 0x167   :  { %252 = dma.done.wait [#allocation9], 128  }
 0x168   :  { %253 = vsyncadd [#allocation9], 4294967168 }
 0x169   :  { %144 = vsyncpa [#allocation3], 1 }
 0x16a   :  { %145 = vsyncpa [#allocation6], 1 }
 0x16b   :  { %146 = vsyncpa [#allocation4], 1 }
 0x16c   :  { %147 = vsyncpa [#allocation9], 1 }

</bundles_post_ra>
